<compile_context>
chip_gen: v7x
topology: tpu7x:2x2x1
jax: 0.10.0
libtpu: 0.0.40
codegen_flags: <defaults>
</compile_context>

<pallas_src>
import functools

import jax
import jax.numpy as jnp
from jax.experimental import pallas as pl
from jax.experimental.pallas import tpu as pltpu


def _viscosity_kernel(t_ref, o_ref, *, nu0, T0, S):
    # Compute in f32 regardless of input dtype (works on v5e/v6e/v7x).
    t_k = t_ref[...].astype(jnp.float32) + jnp.float32(273.15)
    r = t_k * jnp.float32(1.0 / T0)                         # T_K / T0
    coef = jnp.float32(nu0 * (T0 + S))                      # folded constant
    nu = coef / (t_k + jnp.float32(S)) * (r * jnp.sqrt(r))  # r*sqrt(r) == r**1.5
    o_ref[...] = nu.astype(o_ref.dtype)


def _device_kind():
    try:
        return jax.devices()[0].device_kind.lower()
    except Exception:
        return ""


def _plan(n, itemsize):
    """Pick (rows, W, tr, pad) for a flat array of n elements of `itemsize`."""
    kind = _device_kind()
    is_v5e = ("v5 lite" in kind) or ("v5e" in kind)
    is_v7x = ("v7" in kind) or ("7x" in kind)

    # Per-operand block target: 2 MiB on v5e (16 MiB default scoped VMEM with
    # 2 in-bufs + 2 out-bufs), 4 MiB on v6e/v7x.
    target_bytes = (2 << 20) if is_v5e else (4 << 20)
    # Native sublane packing for the dtype: 8 (f32), 16 (bf16/f16), 32 (8-bit).
    pack = max(8, 32 // max(1, itemsize))

    # Prefer a lane width that divides n exactly -> zero-copy reshape, no pad.
    W = None
    for w in (512, 256, 128):
        if n % w == 0:
            W = w
            break
    if W is None:
        W = 128                                  # ragged tail: rare pad path
    rows = pl.cdiv(n, W)
    pad = rows * W - n

    # Rows per grid step, capped by the byte budget, aligned to the packing.
    tr_cap = max(1, (target_bytes // itemsize) // W)
    if rows <= pack:
        tr = rows                                # block == full array rows
    else:
        tr = min(tr_cap, rows)
        tr = max(pack, (tr // pack) * pack)
    return rows, W, tr, pad, is_v5e, is_v7x


def viscosity(temperature_celsius, nu0, T0, S):
    """nu = nu0*(T0+S)/(T_C+273.15+S) * ((T_C+273.15)/T0)**1.5 (Sutherland)."""
    x = temperature_celsius
    orig_shape = x.shape
    orig_dtype = x.dtype
    n = x.size
    itemsize = jnp.dtype(orig_dtype).itemsize

    rows, W, tr, pad, is_v5e, is_v7x = _plan(n, itemsize)

    flat = x.reshape(-1)
    if pad:
        # Ragged tail only (n % 128 != 0): pad with 0 C -> T_K = 273.15, which
        # is benign; the padded results are sliced off below.
        flat = jnp.pad(flat, (0, pad))
    slab = flat.reshape(rows, W)

    # Final row-block may be partial; Pallas masks it (no row padding needed).
    grid = (pl.cdiv(rows, tr),)

    kernel = functools.partial(
        _viscosity_kernel, nu0=float(nu0), T0=float(T0), S=float(S))

    # v7x: split the elementwise grid across both TensorCores.  Plain
    # "parallel" on single-TC v5e/v6e (no codegen change, harmless).
    if is_v7x and grid[0] >= 2:
        dim_sem = (pltpu.CORE_PARALLEL,)
    else:
        dim_sem = ("parallel",)
    cp_kwargs = dict(dimension_semantics=dim_sem)
    if not is_v5e:
        # 2 input bufs + 2 output bufs at <=4 MiB each, plus headroom; within
        # the 32 MiB default scoped limit on v6e/v7x but set explicitly.
        cp_kwargs["vmem_limit_bytes"] = 32 << 20

    out = pl.pallas_call(
        kernel,
        out_shape=jax.ShapeDtypeStruct((rows, W), orig_dtype),
        grid_spec=pltpu.PrefetchScalarGridSpec(
            num_scalar_prefetch=0,
            grid=grid,
            in_specs=[pl.BlockSpec((tr, W), lambda i: (i, 0))],
            out_specs=pl.BlockSpec((tr, W), lambda i: (i, 0)),
        ),
        compiler_params=pltpu.CompilerParams(**cp_kwargs),
    )(slab)

    out_flat = out.reshape(-1)
    if pad:
        out_flat = out_flat[:n]
    return out_flat.reshape(orig_shape)


if __name__ == "__main__":
    # Sutherland's-law constants for air.
    nu0 = 1.48e-5   # m^2/s reference kinematic viscosity
    T0 = 273.15     # K reference temperature
    S = 110.4       # K Sutherland constant

    key = jax.random.PRNGKey(0)

    # NCHW temperature field in Celsius, small shape.
    shape = (2, 4, 16, 16)
    temperature_celsius = 20.0 + 5.0 * jax.random.normal(key, shape, dtype=jnp.float32)

    nu = viscosity(temperature_celsius, nu0, T0, S)
    nu = jax.block_until_ready(nu)

    # Reference (pure JAX, mirrors the PyTorch forward exactly).
    t_k = temperature_celsius + 273.15
    nu_ref = nu0 * (T0 + S) / (t_k + S) * (t_k / T0) ** 1.5

    assert nu.shape == shape
    assert nu.dtype == temperature_celsius.dtype
    assert jnp.allclose(nu, nu_ref, rtol=1e-5, atol=1e-10), "mismatch vs reference"

    print("KERNEL_OK")
</pallas_src>

<mosaic_0001>
module attributes {stable_mosaic.version = 11 : i64} {
  func.func @_viscosity_kernel(%arg0: i32, %arg1: memref<4x512xf32, #tpu.memory_space<vmem>>, %arg2: memref<4x512xf32, #tpu.memory_space<vmem>>) attributes {dimension_semantics = [#tpu.dimension_semantics<parallel>], iteration_bounds = array<i64: 1>, scalar_prefetch = 0 : i64, scratch_operands = 0 : i64, tpu.core_type = #tpu.core_type<tc>, window_params = [{transform_indices = @transform_0, window_bounds = array<i64: 4, 512>}, {transform_indices = @transform_1, window_bounds = array<i64: 4, 512>}]} {
    %c0 = arith.constant 0 : index
    %c0_0 = arith.constant 0 : index
    %0 = vector.load %arg1[%c0, %c0_0] : memref<4x512xf32, #tpu.memory_space<vmem>>, vector<4x512xf32>
    %cst = arith.constant 2.731500e+02 : f32
    %1 = vector.broadcast %cst : f32 to vector<4x512xf32>
    %2 = arith.addf %0, %1 : vector<4x512xf32>
    %cst_1 = arith.constant 0.00366099202 : f32
    %3 = vector.broadcast %cst_1 : f32 to vector<4x512xf32>
    %4 = arith.mulf %2, %3 : vector<4x512xf32>
    %cst_2 = arith.constant 1.104000e+02 : f32
    %5 = vector.broadcast %cst_2 : f32 to vector<4x512xf32>
    %6 = arith.addf %2, %5 : vector<4x512xf32>
    %cst_3 = arith.constant 5.676540e-03 : f32
    %7 = vector.broadcast %cst_3 : f32 to vector<4x512xf32>
    %8 = arith.divf %7, %6 : vector<4x512xf32>
    %9 = math.sqrt %4 : vector<4x512xf32>
    %10 = arith.mulf %4, %9 : vector<4x512xf32>
    %11 = arith.mulf %8, %10 : vector<4x512xf32>
    %c0_4 = arith.constant 0 : index
    %c0_5 = arith.constant 0 : index
    %12 = vector.load %arg2[%c0_4, %c0_5] : memref<4x512xf32, #tpu.memory_space<vmem>>, vector<4x512xf32>
    tpu.vector_store %arg2[%c0_4, %c0_5], %11 {strides = array<i32>} : memref<4x512xf32, #tpu.memory_space<vmem>>, vector<4x512xf32>,
    return
  }
  func.func @transform_0(%arg0: i32) -> (i32, i32) {
    %c0_i32 = arith.constant 0 : i32
    %c0_i32_0 = arith.constant 0 : i32
    return %arg0, %c0_i32 : i32, i32
  }
  func.func @transform_1(%arg0: i32) -> (i32, i32) {
    %c0_i32 = arith.constant 0 : i32
    %c0_i32_0 = arith.constant 0 : i32
    return %arg0, %c0_i32 : i32, i32
  }
}

</mosaic_0001>

<bundles_post_ra>
// kernel: tpu_custom_call.1
= control target key start
LH: loop header
LB: loop body
LE: loop exit
PB: predicated region body
PF: predicated region fallthrough
CT: control target
= control target key end

     0   :  { %6 = vsyncpa [#allocation3], 0  ;;  %s162_s0 = inlined_call_operand.hbm [shape: f32[4,512], index: 0, kind: input, shape index: {}]   ;;  %s163_s1 = inlined_call_operand.hbm [shape: f32[4,512], index: 1, kind: output, shape index: {}]  }
   0x1   :  { %7 = vsyncpa [#allocation4], 0  ;;  %s126_s6 = smov [#allocation2]   ;;  %s78_s10 = scalar_lea.hbm %s162_s0, 256 }
   0x2   :  { %s14_s7 = sshll.u32 %s126_s6, 4  ;;  %p79_p0 = scmp.ne.s32.totalorder %s162_s0, %s78_s10  ;;  %s15_s7 = int_to_ptr.vmem [resolvable:$true] %s14_s7 }
   0x3   :  { %p82_p1 = scmp.lt.u32.totalorder %s78_s10, %s162_s0 }
   0x5   :  { %p84_p2 = pnand %p82_p1, %p79_p0 }
   0x7   :  { %87 = shalt.err (!%p84_p2)
}
   0x8   :  { %s88_s15 = scalar_lea.vmem %s15_s7, 256  ;;  %p93_p4 = scmp.lt.s32.totalorder %s15_s7, %s15_s7 }
   0x9   :  { %p89_p3 = scmp.ne.s32.totalorder %s15_s7, %s88_s15  ;;  %p94_p5 = scmp.lt.s32.totalorder %s88_s15, %s88_s15 }
   0xb   :  { %p95_p6 = por %p94_p5, %p93_p4 }
   0xd   :  { %p96_p7 = pnand %p95_p6, %p89_p3 }
   0xf   :  { %99 = shalt.err (!%p96_p7)
}
  0x10   :  { %17 = dma.hbm_to_vmem [thread:$0]  %s162_s0, 256, %s15_s7, [#allocation3]  }
  0x11   :  { %122 = dma.done.wait [#allocation3], 256  }
  0x12   :  { %123 = vsyncadd [#allocation3], 4294967040  ;;  %v21_v0 = vld [vmem:[#allocation2] sm:$0xff]  ;;  %v22_v1 = vld [vmem:[#allocation2 + $0x8] sm:$0xff]  ;;  %s127_s0 = smov [#allocation5]  }
  0x13   :  { %v23_v2 = vadd.f32 273.15, %v21_v0  ;;  %v24_v3 = vadd.f32 273.15, %v22_v1  ;;  %s59_s18 = sshll.u32 %s127_s0, 4  ;;  %s60_s18 = int_to_ptr.vmem [resolvable:$true] %s59_s18 }
  0x14   :  { %s100_s19 = scalar_lea.vmem %s60_s18, 256  ;;  %p105_p9 = scmp.lt.s32.totalorder %s60_s18, %s60_s18 }
  0x15   :  { %v25_v4 = vmul.f32 0.003660992, %v23_v2  ;;  %v27_v5 = vadd.f32 110.4, %v23_v2  ;;  %v26_v6 = vmul.f32 0.003660992, %v24_v3  ;;  %p101_p8 = scmp.ne.s32.totalorder %s60_s18, %s100_s19  ;;  %p106_p10 = scmp.lt.s32.totalorder %s100_s19, %s100_s19 }
  0x16   :  { %v28_v7 = vadd.f32 110.4, %v24_v3 }
  0x17   :  { %70 = vrcp.f32 %v27_v5  ;;  %vm35_vm0 = vcmp.eq.f32.partialorder %v25_v4, inf  ;;  %v38_v10 = vand.u32 2147483648, %v25_v4  ;;  %vm37_vm1 = vcmp.eq.f32.partialorder %v25_v4, 0.0  ;;  %p107_p11 = por %p106_p10, %p105_p9 }
  0x18   :  { %72 = vrsqrt.f32 %v25_v4  ;;  %vm42_vm2 = vcmp.eq.f32.partialorder %v26_v6, inf  ;;  %v45_v14 = vand.u32 2147483648, %v26_v6  ;;  %vm44_vm3 = vcmp.eq.f32.partialorder %v26_v6, 0.0 }
  0x19   :  { %74 = vrcp.f32 %v28_v7  ;;  %p108_p12 = pnand %p107_p11, %p101_p8 }
  0x1a   :  { %76 = vrsqrt.f32 %v26_v6 }
  0x21   :  { %v71_v8 = vpop.eup %70 }
  0x22   :  { %v73_v9 = vpop.eup %72  ;;  %v30_v15 = vmul.f32 0.00567654, %v71_v8 }
  0x23   :  { %v75_v11 = vpop.eup %74  ;;  %v34_v12 = vmul.f32 %v73_v9, %v25_v4 }
  0x24   :  { %v77_v13 = vpop.eup %76  ;;  %v32_v20 = vmul.f32 0.00567654, %v75_v11 }
  0x25   :  { %v36_v16 = vsel %vm35_vm0, %v25_v4, %v34_v12  ;;  %v41_v17 = vmul.f32 %v77_v13, %v26_v6 }
  0x26   :  { %v39_v18 = vsel %vm37_vm1, %v38_v10, %v36_v16 }
  0x27   :  { %v47_v19 = vmul.f32 %v39_v18, %v25_v4  ;;  %v43_v21 = vsel %vm42_vm2, %v26_v6, %v41_v17 }
  0x28   :  { %v46_v22 = vsel %vm44_vm3, %v45_v14, %v43_v21 }
  0x29   :  { %v49_v23 = vmul.f32 %v47_v19, %v30_v15  ;;  %v48_v24 = vmul.f32 %v46_v22, %v26_v6 }
  0x2b   :  { %51 = vst [vmem:[#allocation5] sm:$0xff] %v49_v23  ;;  %v50_v25 = vmul.f32 %v48_v24, %v32_v20 }
  0x2d   :  { %52 = vst [vmem:[#allocation5 + $0x8] sm:$0xff] %v50_v25 }
  0x2e   :  { %111 = shalt.err (!%p108_p12)
}
  0x2f   :  { %s112_s22 = scalar_lea.hbm %s163_s1, 256 }
  0x30   :  { %p113_p13 = scmp.ne.s32.totalorder %s163_s1, %s112_s22  ;;  %p116_p0 = scmp.lt.u32.totalorder %s112_s22, %s163_s1 }
  0x32   :  { %p118_p1 = pnand %p116_p0, %p113_p13 }
  0x34   :  { %121 = shalt.err (!%p118_p1)
}
  0x35   :  { %62 = dma.vmem_to_hbm [thread:$0]  %s60_s18, 256, %s163_s1, [#allocation4]  }
  0x36   :  { %124 = dma.done.wait [#allocation4], 256  }
  0x37   :  { %125 = vsyncadd [#allocation4], 4294967040 }
  0x38   :  { %66 = vsyncpa [#allocation3], 1 }
  0x39   :  { %67 = vsyncpa [#allocation4], 1 }

</bundles_post_ra>
